<compile_context>
chip_gen: v5e
topology: v5e:2x2
jax: 0.10.0
libtpu: 0.0.40
codegen_flags: <defaults>
</compile_context>

<pallas_src>
import functools

import jax
import jax.numpy as jnp
from jax.experimental import pallas as pl
from jax.experimental.pallas import tpu as pltpu


def matforward_kernel(x_ref, wkr_ref, wki_ref, wp_ref, war_ref, wai_ref, o_ref, *, seq):
    """One grid step = one group of whole batches, everything resident in VMEM.

    x_ref   : (rows, C) bf16   input tokens (rows = batches_per_block * T)
    wkr_ref : (C, C)    bf16   key weight^T, real-output columns
    wki_ref : (C, C)    bf16   key weight^T, imag-output columns
    wp_ref  : (C, C)    bf16   RotaryMemory.process weight^T
    war_ref : (C, C)    bf16   activation weight^T, real-input rows
    wai_ref : (C, C)    bf16   activation weight^T, imag-input rows
    o_ref   : (rows, C) bf16   output
    """
    rows, c = x_ref.shape
    nbatch = rows // seq
    x = x_ref[...]

    def linear_bf16(v, w_ref):
        # bf16 MXU matmul, f32 accumulation, rounded back to bf16 (PyTorch
        # bf16 nn.Linear output) then widened to f32 for the elementwise math.
        y = jnp.dot(v, w_ref[...], preferred_element_type=jnp.float32)
        return y.astype(jnp.bfloat16).astype(jnp.float32)

    def act4(v):
        s = jax.nn.sigmoid(jnp.maximum(v, 0.0))
        s2 = s * s
        return s2 * s2

    # ---- key Linear, split into real / imag output planes (no lane concat) ----
    a_re = act4(linear_bf16(x, wkr_ref))                      # (rows, C) f32
    a_im = act4(linear_bf16(x, wki_ref))                      # (rows, C) f32

    # ---- complex magnitude & normalization (one exact EUP reciprocal) ----
    scale = jnp.sqrt(a_re * a_re + a_im * a_im) + 1e-8        # (rows, C) f32
    inv = pl.reciprocal(scale)                                # exact: no drift over T
    r = a_re * inv
    i = a_im * inv

    # ---- within-sequence position mask, built in-kernel (no pos input) ----
    # Blocks contain whole batches, so position = row index mod T; built by
    # tiling a (T, 1) iota (sublane concat, once) -- avoids vector mod/div.
    pos_seq = jax.lax.broadcasted_iota(jnp.int32, (seq, 1), 0)
    pos = pos_seq if nbatch == 1 else jnp.concatenate([pos_seq] * nbatch, axis=0)
    pos = jnp.broadcast_to(pos, (rows, c))                    # hoisted lane broadcast

    # ---- segmented cumulative complex product along T (log-depth scan) ----
    # pltpu.roll shifts previous partial products down by `off` rows (XLU),
    # jnp.where injects the multiplicative identity wherever the shift would
    # cross a batch boundary (pos < off), keeping batches independent.
    off = 1
    while off < seq:                                          # unrolled: log2(T) steps
        keep = pos >= off
        r_sh = jnp.where(keep, pltpu.roll(r, shift=off, axis=0), 1.0)
        i_sh = jnp.where(keep, pltpu.roll(i, shift=off, axis=0), 0.0)
        r, i = r * r_sh - i * i_sh, r * i_sh + i * r_sh
        off *= 2

    # ---- process Linear on scale, then complex * real ----
    p = linear_bf16(scale.astype(jnp.bfloat16), wp_ref)       # (rows, C) f32
    out_re = (r * p).astype(jnp.bfloat16)
    out_im = (i * p).astype(jnp.bfloat16)

    # ---- activation Linear as two dots summed in f32 (no lane concat) ----
    y = (jnp.dot(out_re, war_ref[...], preferred_element_type=jnp.float32)
         + jnp.dot(out_im, wai_ref[...], preferred_element_type=jnp.float32))
    y = y.astype(jnp.bfloat16).astype(jnp.float32)
    o_ref[...] = jax.nn.sigmoid(y).astype(jnp.bfloat16)


def pack_weights(w_key, w_process, w_activation):
    """One-time (parameter-load time) packing. PyTorch (out, in) layout in,
    kernel-ready de-interleaved / transposed layout out. Pure reshuffle, exact."""
    # key: output row 2j -> real part of complex j, row 2j+1 -> imag part.
    wk_re_t = jnp.transpose(w_key[0::2, :])                    # (C, C)
    wk_im_t = jnp.transpose(w_key[1::2, :])                    # (C, C)
    wp_t = jnp.transpose(w_process)                            # (C, C)
    # activation: input col 2j multiplies re_j, col 2j+1 multiplies im_j.
    wa_re_t = jnp.transpose(w_activation[:, 0::2])             # (C, C)
    wa_im_t = jnp.transpose(w_activation[:, 1::2])             # (C, C)
    return wk_re_t, wk_im_t, wp_t, wa_re_t, wa_im_t


def _pick_batches_per_block(B, T, C, *, budget_bytes=8 * 1024 * 1024,
                            live_f32_slabs=18):
    """Largest divisor of B whose block keeps ~live_f32_slabs f32 (rows, C)
    working slabs under budget_bytes (sized for v7x's 64 MiB VMEM with
    double-buffering headroom). Block sublane dim stays 8-aligned unless the
    block covers the whole array."""
    def ok(bpb):
        rows = bpb * T
        aligned = (rows % 8 == 0) or (bpb == B)
        fits = rows * C * 4 * live_f32_slabs <= budget_bytes
        return aligned and (fits or bpb == 1)
    for bpb in range(B, 0, -1):
        if B % bpb == 0 and ok(bpb):
            return bpb
    return B


@functools.partial(jax.jit, static_argnames=("batches_per_block",))
def mat_forward(x, wk_re_t, wk_im_t, wp_t, wa_re_t, wa_im_t,
                batches_per_block=None):
    """x: (B, T, C) bf16. Weights pre-packed by pack_weights()."""
    B, T, C = x.shape
    BT = B * T
    bpb = (_pick_batches_per_block(B, T, C)
           if batches_per_block is None else batches_per_block)
    assert B % bpb == 0, "batches_per_block must divide B"
    rows = bpb * T
    grid = (B // bpb,)

    x2d = x.reshape(BT, C)                                     # row-major bitcast

    vmem = pltpu.MemorySpace.VMEM
    io_spec = lambda: pl.BlockSpec((rows, C), lambda g: (g, 0), memory_space=vmem)
    w_spec = lambda: pl.BlockSpec((C, C), lambda g: (0, 0), memory_space=vmem)

    # Advisory numbers: 5 (BT,C)x(C,C) GEMMs; sigmoid/sqrt/recip transcendentals.
    cost = pl.CostEstimate(
        flops=2 * BT * C * C * 5,
        transcendentals=5 * BT * C,
        bytes_accessed=BT * C * 2 * 2 + 5 * C * C * 2)

    live_bytes = rows * C * 4 * 18                             # live f32 slabs / block
    vmem_limit = int(min(64 * 1024 * 1024, max(16 * 1024 * 1024, 4 * live_bytes)))

    kernel = functools.partial(matforward_kernel, seq=T)
    y2d = pl.pallas_call(
        kernel,
        out_shape=jax.ShapeDtypeStruct((BT, C), jnp.bfloat16),
        grid=grid,
        in_specs=[io_spec(), w_spec(), w_spec(), w_spec(), w_spec(), w_spec()],
        out_specs=io_spec(),
        compiler_params=pltpu.CompilerParams(
            dimension_semantics=("parallel",),     # blocks independent -> 2nd TC on v7x
            vmem_limit_bytes=vmem_limit),
        cost_estimate=cost,
    )(x2d, wk_re_t, wk_im_t, wp_t, wa_re_t, wa_im_t)
    return y2d.reshape(B, T, C)


def reference(x, w_key, w_process, w_activation):
    """Pure-JAX mirror of the PyTorch forward (same dtype casts)."""
    B, T, C = x.shape
    k = jnp.einsum("btc,oc->bto", x, w_key,
                   preferred_element_type=jnp.float32)
    k = k.astype(jnp.bfloat16).astype(jnp.float32)             # (B, T, 2C)
    a = jax.nn.sigmoid(jax.nn.relu(k)) ** 4
    pair = a.reshape(B, T, C, 2)
    re, im = pair[..., 0], pair[..., 1]
    scale = jnp.sqrt(re * re + im * im) + 1e-8
    z = (re / scale) + 1j * (im / scale)
    kv = jnp.cumprod(z.astype(jnp.complex64), axis=1)
    p = jnp.einsum("btc,oc->bto", scale.astype(jnp.bfloat16), w_process,
                   preferred_element_type=jnp.float32)
    p = p.astype(jnp.bfloat16).astype(jnp.float32)
    kvp = kv * p
    feat = jnp.stack([kvp.real, kvp.imag], axis=-1).reshape(B, T, 2 * C)
    y = jnp.einsum("bti,oi->bto", feat.astype(jnp.bfloat16), w_activation,
                   preferred_element_type=jnp.float32)
    y = y.astype(jnp.bfloat16).astype(jnp.float32)
    return jax.nn.sigmoid(y).astype(jnp.bfloat16)


if __name__ == "__main__":
    # Small shapes implied by the module: args.n_embd = 32, B = 2, T = 8.
    B, T, n_embd = 2, 8, 32
    C2 = 2 * n_embd

    key = jax.random.PRNGKey(0)
    kx, k1, k2, k3 = jax.random.split(key, 4)
    x = jax.random.normal(kx, (B, T, n_embd), dtype=jnp.float32).astype(jnp.bfloat16)
    # nn.Linear weights, (out_features, in_features), bf16, deterministic init.
    w_key_w = (0.05 * jax.random.normal(k1, (C2, n_embd))).astype(jnp.bfloat16)
    w_process_w = (0.05 * jax.random.normal(k2, (n_embd, n_embd))).astype(jnp.bfloat16)
    w_activation_w = (0.05 * jax.random.normal(k3, (n_embd, C2))).astype(jnp.bfloat16)

    # One-time parameter packing, hoisted out of the per-call (jitted) path.
    packed = jax.block_until_ready(
        pack_weights(w_key_w, w_process_w, w_activation_w))

    ref = reference(x, w_key_w, w_process_w, w_activation_w)

    # Auto-tiled run: at toy shapes the whole problem is one VMEM-resident block.
    out = jax.block_until_ready(mat_forward(x, *packed))
    assert out.shape == (B, T, n_embd) and out.dtype == jnp.bfloat16
    assert jnp.allclose(out.astype(jnp.float32), ref.astype(jnp.float32),
                        atol=2e-2, rtol=2e-2)

    # Multi-block run (one batch per block) to exercise the parallel grid path.
    out2 = jax.block_until_ready(mat_forward(x, *packed, batches_per_block=1))
    assert jnp.allclose(out2.astype(jnp.float32), ref.astype(jnp.float32),
                        atol=2e-2, rtol=2e-2)

    print("KERNEL_OK")
</pallas_src>

<mosaic_0001>
module attributes {stable_mosaic.version = 11 : i64} {
  func.func @matforward_kernel(%arg0: i32, %arg1: memref<16x32xbf16, #tpu.memory_space<vmem>>, %arg2: memref<32x32xbf16, #tpu.memory_space<vmem>>, %arg3: memref<32x32xbf16, #tpu.memory_space<vmem>>, %arg4: memref<32x32xbf16, #tpu.memory_space<vmem>>, %arg5: memref<32x32xbf16, #tpu.memory_space<vmem>>, %arg6: memref<32x32xbf16, #tpu.memory_space<vmem>>, %arg7: memref<16x32xbf16, #tpu.memory_space<vmem>>) attributes {dimension_semantics = [#tpu.dimension_semantics<parallel>], iteration_bounds = array<i64: 1>, scalar_prefetch = 0 : i64, scratch_operands = 0 : i64, tpu.core_type = #tpu.core_type<tc>, window_params = [{transform_indices = @transform_0, window_bounds = array<i64: 16, 32>}, {pipeline_mode = #tpu.pipeline_mode<synchronous>, transform_indices = @transform_1, window_bounds = array<i64: 32, 32>}, {pipeline_mode = #tpu.pipeline_mode<synchronous>, transform_indices = @transform_2, window_bounds = array<i64: 32, 32>}, {pipeline_mode = #tpu.pipeline_mode<synchronous>, transform_indices = @transform_3, window_bounds = array<i64: 32, 32>}, {pipeline_mode = #tpu.pipeline_mode<synchronous>, transform_indices = @transform_4, window_bounds = array<i64: 32, 32>}, {pipeline_mode = #tpu.pipeline_mode<synchronous>, transform_indices = @transform_5, window_bounds = array<i64: 32, 32>}, {transform_indices = @transform_6, window_bounds = array<i64: 16, 32>}]} {
    %c0 = arith.constant 0 : index
    %c0_0 = arith.constant 0 : index
    %0 = vector.load %arg1[%c0, %c0_0] : memref<16x32xbf16, #tpu.memory_space<vmem>>, vector<16x32xbf16>
    %c0_1 = arith.constant 0 : index
    %c0_2 = arith.constant 0 : index
    %1 = vector.load %arg2[%c0_1, %c0_2] : memref<32x32xbf16, #tpu.memory_space<vmem>>, vector<32x32xbf16>
    %cst = arith.constant dense<0.000000e+00> : vector<16x32xf32>
    %2 = tpu.matmul %0, %1, %cst {dimension_numbers = #tpu.dot_dimension_numbers<[1], [0], [0], [1], [0, 0, 1, 1], [], []>} : vector<16x32xbf16>, vector<32x32xbf16>, vector<16x32xf32> -> vector<16x32xf32>
    %3 = arith.truncf %2 : vector<16x32xf32> to vector<16x32xbf16>
    %4 = arith.extf %3 : vector<16x32xbf16> to vector<16x32xf32>
    %cst_3 = arith.constant 0.000000e+00 : f32
    %5 = vector.broadcast %cst_3 : f32 to vector<16x32xf32>
    %6 = arith.maximumf %4, %5 : vector<16x32xf32>
    %7 = arith.negf %6 : vector<16x32xf32>
    %8 = math.exp %7 : vector<16x32xf32>
    %cst_4 = arith.constant 1.000000e+00 : f32
    %9 = vector.broadcast %cst_4 : f32 to vector<16x32xf32>
    %10 = arith.addf %9, %8 : vector<16x32xf32>
    %11 = arith.divf %9, %10 : vector<16x32xf32>
    %12 = arith.mulf %11, %11 : vector<16x32xf32>
    %13 = arith.mulf %12, %12 : vector<16x32xf32>
    %c0_5 = arith.constant 0 : index
    %c0_6 = arith.constant 0 : index
    %14 = vector.load %arg3[%c0_5, %c0_6] : memref<32x32xbf16, #tpu.memory_space<vmem>>, vector<32x32xbf16>
    %cst_7 = arith.constant dense<0.000000e+00> : vector<16x32xf32>
    %15 = tpu.matmul %0, %14, %cst_7 {dimension_numbers = #tpu.dot_dimension_numbers<[1], [0], [0], [1], [0, 0, 1, 1], [], []>} : vector<16x32xbf16>, vector<32x32xbf16>, vector<16x32xf32> -> vector<16x32xf32>
    %16 = arith.truncf %15 : vector<16x32xf32> to vector<16x32xbf16>
    %17 = arith.extf %16 : vector<16x32xbf16> to vector<16x32xf32>
    %cst_8 = arith.constant 0.000000e+00 : f32
    %18 = vector.broadcast %cst_8 : f32 to vector<16x32xf32>
    %19 = arith.maximumf %17, %18 : vector<16x32xf32>
    %20 = arith.negf %19 : vector<16x32xf32>
    %21 = math.exp %20 : vector<16x32xf32>
    %cst_9 = arith.constant 1.000000e+00 : f32
    %22 = vector.broadcast %cst_9 : f32 to vector<16x32xf32>
    %23 = arith.addf %22, %21 : vector<16x32xf32>
    %24 = arith.divf %22, %23 : vector<16x32xf32>
    %25 = arith.mulf %24, %24 : vector<16x32xf32>
    %26 = arith.mulf %25, %25 : vector<16x32xf32>
    %27 = arith.mulf %13, %13 : vector<16x32xf32>
    %28 = arith.mulf %26, %26 : vector<16x32xf32>
    %29 = arith.addf %27, %28 : vector<16x32xf32>
    %30 = math.sqrt %29 : vector<16x32xf32>
    %cst_10 = arith.constant 9.99999993E-9 : f32
    %31 = vector.broadcast %cst_10 : f32 to vector<16x32xf32>
    %32 = arith.addf %30, %31 : vector<16x32xf32>
    %33 = tpu.reciprocal %32 : vector<16x32xf32> -> vector<16x32xf32>
    %34 = arith.mulf %13, %33 : vector<16x32xf32>
    %35 = arith.mulf %26, %33 : vector<16x32xf32>
    %36 = tpu.iota {dimensions = array<i32: 0>} : vector<8x1xi32>
    %37 = tpu.concatenate %36, %36 in 0 : vector<8x1xi32>, vector<8x1xi32> -> vector<16x1xi32>
    %38 = vector.shape_cast %37 : vector<16x1xi32> to vector<16x1xi32>
    %39 = vector.broadcast %38 : vector<16x1xi32> to vector<16x32xi32>
    %c1_i32 = arith.constant 1 : i32
    %40 = vector.broadcast %c1_i32 : i32 to vector<16x32xi32>
    %41 = arith.cmpi sge, %39, %40 : vector<16x32xi32>
    %c1_i32_11 = arith.constant 1 : i32
    %42 = tpu.dynamic_rotate %34 by %c1_i32_11 dim 0 : vector<16x32xf32>, i32 -> vector<16x32xf32>
    %cst_12 = arith.constant 1.000000e+00 : f32
    %43 = vector.broadcast %cst_12 : f32 to vector<16x32xf32>
    %44 = arith.select %41, %42, %43 : vector<16x32xi1>, vector<16x32xf32>
    %c1_i32_13 = arith.constant 1 : i32
    %45 = tpu.dynamic_rotate %35 by %c1_i32_13 dim 0 : vector<16x32xf32>, i32 -> vector<16x32xf32>
    %cst_14 = arith.constant 0.000000e+00 : f32
    %46 = vector.broadcast %cst_14 : f32 to vector<16x32xf32>
    %47 = arith.select %41, %45, %46 : vector<16x32xi1>, vector<16x32xf32>
    %48 = arith.mulf %34, %44 : vector<16x32xf32>
    %49 = arith.mulf %35, %47 : vector<16x32xf32>
    %50 = arith.subf %48, %49 : vector<16x32xf32>
    %51 = arith.mulf %34, %47 : vector<16x32xf32>
    %52 = arith.mulf %35, %44 : vector<16x32xf32>
    %53 = arith.addf %51, %52 : vector<16x32xf32>
    %c2_i32 = arith.constant 2 : i32
    %54 = vector.broadcast %c2_i32 : i32 to vector<16x32xi32>
    %55 = arith.cmpi sge, %39, %54 : vector<16x32xi32>
    %c2_i32_15 = arith.constant 2 : i32
    %56 = tpu.dynamic_rotate %50 by %c2_i32_15 dim 0 : vector<16x32xf32>, i32 -> vector<16x32xf32>
    %cst_16 = arith.constant 1.000000e+00 : f32
    %57 = vector.broadcast %cst_16 : f32 to vector<16x32xf32>
    %58 = arith.select %55, %56, %57 : vector<16x32xi1>, vector<16x32xf32>
    %c2_i32_17 = arith.constant 2 : i32
    %59 = tpu.dynamic_rotate %53 by %c2_i32_17 dim 0 : vector<16x32xf32>, i32 -> vector<16x32xf32>
    %cst_18 = arith.constant 0.000000e+00 : f32
    %60 = vector.broadcast %cst_18 : f32 to vector<16x32xf32>
    %61 = arith.select %55, %59, %60 : vector<16x32xi1>, vector<16x32xf32>
    %62 = arith.mulf %50, %58 : vector<16x32xf32>
    %63 = arith.mulf %53, %61 : vector<16x32xf32>
    %64 = arith.subf %62, %63 : vector<16x32xf32>
    %65 = arith.mulf %50, %61 : vector<16x32xf32>
    %66 = arith.mulf %53, %58 : vector<16x32xf32>
    %67 = arith.addf %65, %66 : vector<16x32xf32>
    %c4_i32 = arith.constant 4 : i32
    %68 = vector.broadcast %c4_i32 : i32 to vector<16x32xi32>
    %69 = arith.cmpi sge, %39, %68 : vector<16x32xi32>
    %c4_i32_19 = arith.constant 4 : i32
    %70 = tpu.dynamic_rotate %64 by %c4_i32_19 dim 0 : vector<16x32xf32>, i32 -> vector<16x32xf32>
    %cst_20 = arith.constant 1.000000e+00 : f32
    %71 = vector.broadcast %cst_20 : f32 to vector<16x32xf32>
    %72 = arith.select %69, %70, %71 : vector<16x32xi1>, vector<16x32xf32>
    %c4_i32_21 = arith.constant 4 : i32
    %73 = tpu.dynamic_rotate %67 by %c4_i32_21 dim 0 : vector<16x32xf32>, i32 -> vector<16x32xf32>
    %cst_22 = arith.constant 0.000000e+00 : f32
    %74 = vector.broadcast %cst_22 : f32 to vector<16x32xf32>
    %75 = arith.select %69, %73, %74 : vector<16x32xi1>, vector<16x32xf32>
    %76 = arith.mulf %64, %72 : vector<16x32xf32>
    %77 = arith.mulf %67, %75 : vector<16x32xf32>
    %78 = arith.subf %76, %77 : vector<16x32xf32>
    %79 = arith.mulf %64, %75 : vector<16x32xf32>
    %80 = arith.mulf %67, %72 : vector<16x32xf32>
    %81 = arith.addf %79, %80 : vector<16x32xf32>
    %82 = arith.truncf %32 : vector<16x32xf32> to vector<16x32xbf16>
    %c0_23 = arith.constant 0 : index
    %c0_24 = arith.constant 0 : index
    %83 = vector.load %arg4[%c0_23, %c0_24] : memref<32x32xbf16, #tpu.memory_space<vmem>>, vector<32x32xbf16>
    %cst_25 = arith.constant dense<0.000000e+00> : vector<16x32xf32>
    %84 = tpu.matmul %82, %83, %cst_25 {dimension_numbers = #tpu.dot_dimension_numbers<[1], [0], [0], [1], [0, 0, 1, 1], [], []>} : vector<16x32xbf16>, vector<32x32xbf16>, vector<16x32xf32> -> vector<16x32xf32>
    %85 = arith.truncf %84 : vector<16x32xf32> to vector<16x32xbf16>
    %86 = arith.extf %85 : vector<16x32xbf16> to vector<16x32xf32>
    %87 = arith.mulf %78, %86 : vector<16x32xf32>
    %88 = arith.truncf %87 : vector<16x32xf32> to vector<16x32xbf16>
    %89 = arith.mulf %81, %86 : vector<16x32xf32>
    %90 = arith.truncf %89 : vector<16x32xf32> to vector<16x32xbf16>
    %c0_26 = arith.constant 0 : index
    %c0_27 = arith.constant 0 : index
    %91 = vector.load %arg5[%c0_26, %c0_27] : memref<32x32xbf16, #tpu.memory_space<vmem>>, vector<32x32xbf16>
    %cst_28 = arith.constant dense<0.000000e+00> : vector<16x32xf32>
    %92 = tpu.matmul %88, %91, %cst_28 {dimension_numbers = #tpu.dot_dimension_numbers<[1], [0], [0], [1], [0, 0, 1, 1], [], []>} : vector<16x32xbf16>, vector<32x32xbf16>, vector<16x32xf32> -> vector<16x32xf32>
    %c0_29 = arith.constant 0 : index
    %c0_30 = arith.constant 0 : index
    %93 = vector.load %arg6[%c0_29, %c0_30] : memref<32x32xbf16, #tpu.memory_space<vmem>>, vector<32x32xbf16>
    %cst_31 = arith.constant dense<0.000000e+00> : vector<16x32xf32>
    %94 = tpu.matmul %90, %93, %cst_31 {dimension_numbers = #tpu.dot_dimension_numbers<[1], [0], [0], [1], [0, 0, 1, 1], [], []>} : vector<16x32xbf16>, vector<32x32xbf16>, vector<16x32xf32> -> vector<16x32xf32>
    %95 = arith.addf %92, %94 : vector<16x32xf32>
    %96 = arith.truncf %95 : vector<16x32xf32> to vector<16x32xbf16>
    %97 = arith.extf %96 : vector<16x32xbf16> to vector<16x32xf32>
    %98 = arith.negf %97 : vector<16x32xf32>
    %99 = math.exp %98 : vector<16x32xf32>
    %cst_32 = arith.constant 1.000000e+00 : f32
    %100 = vector.broadcast %cst_32 : f32 to vector<16x32xf32>
    %101 = arith.addf %100, %99 : vector<16x32xf32>
    %102 = arith.divf %100, %101 : vector<16x32xf32>
    %103 = arith.truncf %102 : vector<16x32xf32> to vector<16x32xbf16>
    %c0_33 = arith.constant 0 : index
    %c0_34 = arith.constant 0 : index
    %104 = vector.load %arg7[%c0_33, %c0_34] : memref<16x32xbf16, #tpu.memory_space<vmem>>, vector<16x32xbf16>
    tpu.vector_store %arg7[%c0_33, %c0_34], %103 {strides = array<i32>} : memref<16x32xbf16, #tpu.memory_space<vmem>>, vector<16x32xbf16>,
    return
  }
  func.func @transform_0(%arg0: i32) -> (i32, i32) {
    %c0_i32 = arith.constant 0 : i32
    %c0_i32_0 = arith.constant 0 : i32
    return %arg0, %c0_i32 : i32, i32
  }
  func.func @transform_1(%arg0: i32) -> (i32, i32) {
    %c0_i32 = arith.constant 0 : i32
    %c0_i32_0 = arith.constant 0 : i32
    %c0_i32_1 = arith.constant 0 : i32
    return %c0_i32, %c0_i32_0 : i32, i32
  }
  func.func @transform_2(%arg0: i32) -> (i32, i32) {
    %c0_i32 = arith.constant 0 : i32
    %c0_i32_0 = arith.constant 0 : i32
    %c0_i32_1 = arith.constant 0 : i32
    return %c0_i32, %c0_i32_0 : i32, i32
  }
  func.func @transform_3(%arg0: i32) -> (i32, i32) {
    %c0_i32 = arith.constant 0 : i32
    %c0_i32_0 = arith.constant 0 : i32
    %c0_i32_1 = arith.constant 0 : i32
    return %c0_i32, %c0_i32_0 : i32, i32
  }
  func.func @transform_4(%arg0: i32) -> (i32, i32) {
    %c0_i32 = arith.constant 0 : i32
    %c0_i32_0 = arith.constant 0 : i32
    %c0_i32_1 = arith.constant 0 : i32
    return %c0_i32, %c0_i32_0 : i32, i32
  }
  func.func @transform_5(%arg0: i32) -> (i32, i32) {
    %c0_i32 = arith.constant 0 : i32
    %c0_i32_0 = arith.constant 0 : i32
    %c0_i32_1 = arith.constant 0 : i32
    return %c0_i32, %c0_i32_0 : i32, i32
  }
  func.func @transform_6(%arg0: i32) -> (i32, i32) {
    %c0_i32 = arith.constant 0 : i32
    %c0_i32_0 = arith.constant 0 : i32
    return %arg0, %c0_i32 : i32, i32
  }
}

</mosaic_0001>

<bundles_post_ra>
// kernel: mat_forward.1
= control target key start
LH: loop header
LB: loop body
LE: loop exit
PB: predicated region body
PF: predicated region fallthrough
CT: control target
= control target key end

     0   :  { %11 = vsyncpa [#allocation3], 0  ;;  %s1024_s0 = inlined_call_operand.hbm [shape: bf16[16,32], index: 0, kind: input, shape index: {}]   ;;  %s1025_s1 = inlined_call_operand.hbm [shape: bf16[32,32], index: 1, kind: input, shape index: {}]   ;;  %s1026_s2 = inlined_call_operand.hbm [shape: bf16[32,32], index: 2, kind: input, shape index: {}]   ;;  %s1027_s3 = inlined_call_operand.hbm [shape: bf16[32,32], index: 3, kind: input, shape index: {}]   ;;  %s1028_s4 = inlined_call_operand.hbm [shape: bf16[32,32], index: 4, kind: input, shape index: {}]   ;;  %s1029_s5 = inlined_call_operand.hbm [shape: bf16[32,32], index: 5, kind: input, shape index: {}]   ;;  %s1030_s6 = inlined_call_operand.hbm [shape: bf16[16,32], index: 6, kind: output, shape index: {}]  }
   0x1   :  { %12 = vsyncpa [#allocation6], 0 }
   0x2   :  { %13 = vsyncpa [#allocation9], 0 }
   0x3   :  { %14 = vsyncpa [#allocation12], 0 }
   0x4   :  { %15 = vsyncpa [#allocation4], 0  ;;  %s33_s23 = sshll.u32 %s1025_s1, 4  ;;  %s899_s24 = smov [#allocation5]   ;;  %s34_s23 = int_to_ptr.hbm [resolvable:$true] %s33_s23 }
   0x5   :  { %s35_s25 = sshll.u32 %s899_s24, 4  ;;  %s59_s28 = sshll.u32 %s1027_s3, 4  ;;  %s36_s25 = int_to_ptr.vmem [resolvable:$true] %s35_s25  ;;  %s60_s28 = int_to_ptr.hbm [resolvable:$true] %s59_s28 }
   0x6   :  { %s900_s29 = smov 64   ;;  %s901_s30 = smov 4  }
   0x7   :  { %41 = dma.hbm_to_vmem [thread:$0]  %s34_s23, 256, %s36_s25, [#allocation6], %s900_s29, %s900_s29, %s901_s30  }
   0x8   :  { %s902_s7 = smov [#allocation8]   ;;  %s20_s1 = sshll.u32 %s1024_s0, 4  ;;  %s21_s1 = int_to_ptr.hbm [resolvable:$true] %s20_s1 }
   0x9   :  { %s61_s8 = sshll.u32 %s902_s7, 4  ;;  %s46_s12 = sshll.u32 %s1026_s2, 4  ;;  %s62_s8 = int_to_ptr.vmem [resolvable:$true] %s61_s8  ;;  %s47_s12 = int_to_ptr.hbm [resolvable:$true] %s46_s12 }
   0xa   :  { %67 = dma.hbm_to_vmem [thread:$0]  %s60_s28, 256, %s62_s8, [#allocation9], %s900_s29, %s900_s29, %s901_s30  }
   0xb   :  { %s903_s13 = smov [#allocation2]   ;;  %s904_s15 = smov [#allocation7]  }
   0xc   :  { %s22_s14 = sshll.u32 %s903_s13, 4  ;;  %s48_s0 = sshll.u32 %s904_s15, 4  ;;  %s23_s14 = int_to_ptr.vmem [resolvable:$true] %s22_s14  ;;  %s49_s0 = int_to_ptr.vmem [resolvable:$true] %s48_s0 }
   0xd   :  { %28 = dma.hbm_to_vmem [thread:$0]  %s21_s1, 128, %s23_s14, [#allocation3], %s900_s29, %s900_s29, %s901_s30  }
   0xe   :  { %s72_s18 = sshll.u32 %s1028_s4, 4  ;;  %s85_s20 = sshll.u32 %s1029_s5, 4  ;;  %s73_s18 = int_to_ptr.hbm [resolvable:$true] %s72_s18  ;;  %s86_s20 = int_to_ptr.hbm [resolvable:$true] %s85_s20 }
   0xf   :  { %54 = dma.hbm_to_vmem [thread:$0]  %s47_s12, 256, %s49_s0, [#allocation6], %s900_s29, %s900_s29, %s901_s30  }
  0x10   :  { %s905_s21 = smov [#allocation10]   ;;  %s906_s23 = smov [#allocation11]  }
  0x11   :  { %s74_s22 = sshll.u32 %s905_s21, 4  ;;  %s87_s4 = sshll.u32 %s906_s23, 4  ;;  %s75_s22 = int_to_ptr.vmem [resolvable:$true] %s74_s22  ;;  %s88_s4 = int_to_ptr.vmem [resolvable:$true] %s87_s4 }
  0x12   :  { %80 = dma.hbm_to_vmem [thread:$0]  %s73_s18, 256, %s75_s22, [#allocation9], %s900_s29, %s900_s29, %s901_s30  }
  0x13   :  { %93 = dma.hbm_to_vmem [thread:$0]  %s86_s20, 256, %s88_s4, [#allocation12], %s900_s29, %s900_s29, %s901_s30  }
  0x14   :  { %889 = dma.done.wait [#allocation3], 128  }
  0x15   :  { %890 = vsyncadd [#allocation3], 4294967168 }
  0x16   :  { %891 = dma.done.wait [#allocation6], 512  }
  0x17   :  { %892 = vsyncadd [#allocation6], 4294966784 }
  0x18   :  { %893 = dma.done.wait [#allocation9], 512  }
  0x19   :  { %894 = vsyncadd [#allocation9], 4294966784 }
  0x1a   :  { %895 = dma.done.wait [#allocation12], 256  }
  0x1b   :  { %896 = vsyncadd [#allocation12], 4294967040  ;;  %v350_v0 = vlaneseq  ;;  %v907_v1 = vmov 0   ;;  %v669_v3 = vld [vmem:[#allocation5 + $0x8] sm:$0xff]  ;;  %v671_v4 = vld [vmem:[#allocation7 + $0x8] sm:$0xff]  ;;  %vm142_vm0 = vcmask 261120  }
  0x1c   :  { %688 = vset.pattern.permute.xlu0 %v907_v1  ;;  %152 = vmatpush.bf16.msra.mxu0 %v669_v3  ;;  %v668_v5 = vld [vmem:[#allocation5] sm:$0xff]  ;;  %v670_v6 = vld [vmem:[#allocation7] sm:$0xff]  ;;  %v667_v7 = vld [vmem:[#allocation2] sm:$0xff]  ;;  %s908_s5 = smov [#allocation13]   ;;  %s596_s27 = sshll.u32 %s1030_s6, 4  ;;  %s597_s27 = int_to_ptr.hbm [resolvable:$true] %s596_s27 }
  0x1d   :  { %v980_v2 = vshrl.u32 %v350_v0, 7  ;;  %230 = vmatpush.bf16.msra.mxu1 %v671_v4  ;;  %v673_v32 = vld [vmem:[#allocation8 + $0x8] sm:$0xff]  ;;  %v672_v33 = vld [vmem:[#allocation8] sm:$0xff]  ;;  %s594_s24 = sshll.u32 %s908_s5, 4  ;;  %s595_s24 = int_to_ptr.vmem [resolvable:$true] %s594_s24 }
  0x1e   :  { %459 = vmatpush.bf16.msra.mxu2 %v673_v32 }
  0x1f   :  { %353 = vperm.xlu0 %688, %v980_v2  }
  0x20   :  { %153 = vmatpush.bf16.msra.mxu0 %v668_v5 }
  0x21   :  { %231 = vmatpush.bf16.msra.mxu1 %v670_v6 }
  0x22   :  { %460 = vmatpush.bf16.msra.mxu2 %v672_v33 }
  0x23   :  { %624 = vmatmul.msk.bf16.vlgmr.msra.gmra.mxu0 %vm142_vm0, %v667_v7 }
  0x24   :  { %635 = vmatmul.msk.bf16.vlgmr.msra.gmra.mxu1 %vm142_vm0, %v667_v7 }
  0xa0   :  { %v155_v8 = vpop.f32.mrf.mxu0 }
  0xa1   :  { %v233_v9 = vpop.f32.mrf.mxu1  ;;  %v160_v10 = vpack.c.bf16 %v155_v8, %v155_v8 }
  0xa2   :  { %v238_v11 = vpack.c.bf16 %v233_v9, %v233_v9 }
  0xa3   :  { %v162_v12 = vunpack.c.l.bf16 %v160_v10 }
  0xa4   :  { %v240_v13 = vunpack.c.l.bf16 %v238_v11 }
  0xa5   :  { %v164_v14 = vmax.f32 %v162_v12, 0.0 }
  0xa6   :  { %v242_v15 = vmax.f32 %v240_v13, 0.0 }
  0xa7   :  { %v625_v16 = vmul.f32 -1.442695, %v164_v14 }
  0xa8   :  { %v636_v17 = vmul.f32 -1.442695, %v242_v15  ;;  %v157_v18 = vpop.f32.mrf.mxu0 }
  0xa9   :  { %v235_v19 = vpop.f32.mrf.mxu1  ;;  %689 = vpow2.f32 %v625_v16  ;;  %v161_v20 = vpack.c.bf16 %v157_v18, %v157_v18 }
  0xaa   :  { %v239_v21 = vpack.c.bf16 %v235_v19, %v235_v19  ;;  %691 = vpow2.f32 %v636_v17 }
  0xab   :  { %v163_v22 = vunpack.c.l.bf16 %v161_v20 }
  0xac   :  { %v241_v23 = vunpack.c.l.bf16 %v239_v21 }
  0xad   :  { %v165_v24 = vmax.f32 %v163_v22, 0.0 }
  0xae   :  { %v243_v25 = vmax.f32 %v241_v23, 0.0 }
  0xaf   :  { %v690_v26 = vpop.eup %689  ;;  %v626_v27 = vmul.f32 -1.442695, %v165_v24 }
  0xb0   :  { %v692_v28 = vpop.eup %691  ;;  %v172_v29 = vadd.f32 1.0, %v690_v26  ;;  %v637_v30 = vmul.f32 -1.442695, %v243_v25 }
  0xb1   :  { %v250_v31 = vadd.f32 1.0, %v692_v28  ;;  %693 = vpow2.f32 %v626_v27 }
  0xb2   :  { %695 = vrcp.f32 %v172_v29  ;;  %v183_v43 = vand.u32 2147483647, %v172_v29  ;;  %v185_v44 = vand.u32 2147483648, %v172_v29  ;;  %vm179_vm3 = vweird.f32 %v172_v29 }
  0xb3   :  { %697 = vrcp.f32 %v250_v31  ;;  %v263_v47 = vand.u32 2147483648, %v250_v31  ;;  %v261_v49 = vand.u32 2147483647, %v250_v31  ;;  %vm257_vm5 = vweird.f32 %v250_v31 }
  0xb4   :  { %699 = vpow2.f32 %v637_v30  ;;  %v186_v52 = vor.u32 1.1754944e-38, %v185_v44  ;;  %vm184_vm6 = vcmp.eq.f32.partialorder %v183_v43, 8.507059e+37 }
  0xb5   :  { %v264_v55 = vor.u32 1.1754944e-38, %v263_v47  ;;  %vm262_vm8 = vcmp.eq.f32.partialorder %v261_v49, 8.507059e+37 }
  0xb7   :  { %v694_v34 = vpop.eup %693 }
  0xb8   :  { %v696_v35 = vpop.eup %695  ;;  %v173_v36 = vadd.f32 1.0, %v694_v34 }
  0xb9   :  { %v698_v37 = vpop.eup %697  ;;  %v175_v38 = vmul.f32 %v696_v35, %v172_v29  ;;  %vm180_vm1 = vweird.f32 %v696_v35 }
  0xba   :  { %v700_v39 = vpop.eup %699  ;;  %v253_v40 = vmul.f32 %v698_v37, %v250_v31  ;;  %701 = vrcp.f32 %v173_v36  ;;  %vm258_vm2 = vweird.f32 %v698_v37  ;;  %vm181_vm4 = vmor %vm179_vm3, %vm180_vm1  ;;  %v200_v63 = vand.u32 2147483648, %v173_v36 }
  0xbb   :  { %v176_v41 = vsub.f32 1.0, %v175_v38  ;;  %v251_v42 = vadd.f32 1.0, %v700_v39  ;;  %vm259_vm7 = vmor %vm257_vm5, %vm258_vm2  ;;  %v198_v5 = vand.u32 2147483647, %v173_v36  ;;  %vm194_vm10 = vweird.f32 %v173_v36 }
  0xbc   :  { %v254_v45 = vsub.f32 1.0, %v253_v40  ;;  %v201_v10 = vor.u32 1.1754944e-38, %v200_v63 }
  0xbd   :  { %v177_v46 = vmul.f32 %v696_v35, %v176_v41  ;;  %703 = vrcp.f32 %v251_v42  ;;  %v278_v11 = vand.u32 2147483648, %v251_v42  ;;  %v276_v14 = vand.u32 2147483647, %v251_v42 }
  0xbe   :  { %v255_v48 = vmul.f32 %v698_v37, %v254_v45  ;;  %vm199_vm13 = vcmp.eq.f32.partialorder %v198_v5, 8.507059e+37  ;;  %vm272_vm14 = vweird.f32 %v251_v42 }
  0xbf   :  { %v178_v50 = vadd.f32 %v696_v35, %v177_v46  ;;  %v279_v20 = vor.u32 1.1754944e-38, %v278_v11  ;;  %vm277_vm1 = vcmp.eq.f32.partialorder %v276_v14, 8.507059e+37  ;;  %v1004_v11 = vpop.permute.xlu0 %353 }
  0xc0   :  { %v702_v51 = vpop.eup %701  ;;  %v256_v53 = vadd.f32 %v698_v37, %v255_v48 }
  0xc1   :  { %v182_v54 = vsel %vm181_vm4, %v696_v35, %v178_v50  ;;  %v190_v56 = vmul.f32 %v702_v51, %v173_v36  ;;  %vm195_vm9 = vweird.f32 %v702_v51 }
  0xc2   :  { %v187_v57 = vsel %vm184_vm6, %v186_v52, %v182_v54  ;;  %v260_v58 = vsel %vm259_vm7, %v698_v37, %v256_v53  ;;  %vm196_vm11 = vmor %vm194_vm10, %vm195_vm9 }
  0xc3   :  { %v704_v59 = vpop.eup %703  ;;  %v204_v60 = vmul.f32 %v187_v57, %v187_v57  ;;  %v265_v61 = vsel %vm262_vm8, %v264_v55, %v260_v58  ;;  %v191_v62 = vsub.f32 1.0, %v190_v56 }
  0xc4   :  { %v282_v0 = vmul.f32 %v265_v61, %v265_v61  ;;  %v268_v1 = vmul.f32 %v704_v59, %v251_v42  ;;  %vm273_vm12 = vweird.f32 %v704_v59 }
  0xc5   :  { %v985_v3 = vmul.f32 %v204_v60, %v204_v60  ;;  %v192_v4 = vmul.f32 %v702_v51, %v191_v62  ;;  %vm274_vm15 = vmor %vm272_vm14, %vm273_vm12  ;;  %vm355_vm14 = vcmp.ge.s32.totalorder %v1004_v11, 1 }
  0xc6   :  { %v987_v6 = vmul.f32 %v282_v0, %v282_v0  ;;  %v269_v7 = vsub.f32 1.0, %v268_v1 }
  0xc7   :  { %v286_v8 = vmul.f32 %v985_v3, %v985_v3  ;;  %v193_v9 = vadd.f32 %v702_v51, %v192_v4 }
  0xc8   :  { %v288_v12 = vmul.f32 %v987_v6, %v987_v6  ;;  %v270_v13 = vmul.f32 %v704_v59, %v269_v7 }
  0xc9   :  { %v197_v15 = vsel %vm196_vm11, %v702_v51, %v193_v9 }
  0xca   :  { %v290_v16 = vadd.f32 %v288_v12, %v286_v8  ;;  %v202_v17 = vsel %vm199_vm13, %v201_v10, %v197_v15  ;;  %v271_v18 = vadd.f32 %v704_v59, %v270_v13 }
  0xcb   :  { %v205_v19 = vmul.f32 %v202_v17, %v202_v17 }
  0xcc   :  { %v275_v21 = vsel %vm274_vm15, %v704_v59, %v271_v18  ;;  %705 = vrsqrt.f32 %v290_v16  ;;  %vm299_vm2 = vcmp.eq.f32.partialorder %v290_v16, inf  ;;  %v302_v38 = vand.u32 2147483648, %v290_v16 }
  0xcd   :  { %v993_v22 = vmul.f32 %v205_v19, %v205_v19  ;;  %v280_v23 = vsel %vm277_vm1, %v279_v20, %v275_v21  ;;  %vm301_vm3 = vcmp.eq.f32.partialorder %v290_v16, 0.0  ;;  %vm358_vm15 = vcmp.lt.s32.totalorder %v980_v2, 1 }
  0xce   :  { %v283_v24 = vmul.f32 %v280_v23, %v280_v23  ;;  %vm384_vm1 = vcmp.lt.s32.totalorder %v980_v2, 2 }
  0xcf   :  { %v287_v25 = vmul.f32 %v993_v22, %v993_v22 }
  0xd0   :  { %v997_v26 = vmul.f32 %v283_v24, %v283_v24 }
  0xd2   :  { %v706_v27 = vpop.eup %705  ;;  %v289_v28 = vmul.f32 %v997_v26, %v997_v26 }
  0xd3   :  { %v293_v29 = vmul.f32 %v706_v27, %v290_v16 }
  0xd4   :  { %v291_v30 = vadd.f32 %v289_v28, %v287_v25 }
  0xd5   :  { %v294_v31 = vmul.f32 %v706_v27, %v293_v29 }
  0xd6   :  { %707 = vrsqrt.f32 %v291_v30  ;;  %vm311_vm4 = vcmp.eq.f32.partialorder %v291_v30, inf  ;;  %v314_v47 = vand.u32 2147483648, %v291_v30  ;;  %vm313_vm5 = vcmp.eq.f32.partialorder %v291_v30, 0.0 }
  0xd7   :  { %v295_v32 = vmul.f32 0.5, %v294_v31 }
  0xd9   :  { %v296_v33 = vsub.f32 1.5, %v295_v32 }
  0xdb   :  { %v297_v34 = vmul.f32 %v706_v27, %v296_v33 }
  0xdc   :  { %v708_v35 = vpop.eup %707 }
  0xdd   :  { %v298_v36 = vmul.f32 %v297_v34, %v290_v16  ;;  %v305_v37 = vmul.f32 %v708_v35, %v291_v30 }
  0xdf   :  { %v300_v39 = vsel %vm299_vm2, %v290_v16, %v298_v36  ;;  %v306_v40 = vmul.f32 %v708_v35, %v305_v37  ;;  %vm381_vm2 = vcmp.ge.s32.totalorder %v1004_v11, 2 }
  0xe0   :  { %v303_v41 = vsel %vm301_vm3, %v302_v38, %v300_v39  ;;  %vm410_vm3 = vcmp.lt.s32.totalorder %v980_v2, 4 }
  0xe1   :  { %v307_v42 = vmul.f32 0.5, %v306_v40  ;;  %v316_v43 = vadd.f32 1e-08, %v303_v41 }
  0xe3   :  { %v308_v44 = vsub.f32 1.5, %v307_v42  ;;  %709 = vrcp.f32 %v316_v43  ;;  %v329_v55 = vand.u32 2147483648, %v316_v43  ;;  %v327_v57 = vand.u32 2147483647, %v316_v43 }
  0xe4   :  { %vm323_vm7 = vweird.f32 %v316_v43 }
  0xe5   :  { %v309_v45 = vmul.f32 %v708_v35, %v308_v44  ;;  %v330_v59 = vor.u32 1.1754944e-38, %v329_v55  ;;  %vm328_vm9 = vcmp.eq.f32.partialorder %v327_v57, 8.507059e+37 }
  0xe7   :  { %v310_v46 = vmul.f32 %v309_v45, %v291_v30 }
  0xe9   :  { %v710_v48 = vpop.eup %709  ;;  %v312_v49 = vsel %vm311_vm4, %v291_v30, %v310_v46  ;;  %vm407_vm4 = vcmp.ge.s32.totalorder %v1004_v11, 4 }
  0xea   :  { %v315_v50 = vsel %vm313_vm5, %v314_v47, %v312_v49  ;;  %v319_v51 = vmul.f32 %v710_v48, %v316_v43  ;;  %vm324_vm6 = vweird.f32 %v710_v48 }
  0xeb   :  { %v317_v52 = vadd.f32 1e-08, %v315_v50  ;;  %vm325_vm8 = vmor %vm323_vm7, %vm324_vm6 }
  0xec   :  { %v320_v53 = vsub.f32 1.0, %v319_v51 }
  0xed   :  { %v433_v54 = vpack.c.bf16 %v317_v52, %v316_v43  ;;  %711 = vrcp.f32 %v317_v52  ;;  %v343_v5 = vand.u32 2147483648, %v317_v52  ;;  %v341_v8 = vand.u32 2147483647, %v317_v52 }
  0xee   :  { %v321_v56 = vmul.f32 %v710_v48, %v320_v53  ;;  %vm337_vm11 = vweird.f32 %v317_v52 }
  0xef   :  { %646 = vmatmul.msk.bf16.vlgmr.msra.gmra.mxu2 %vm142_vm0, %v433_v54  ;;  %v344_v10 = vor.u32 1.1754944e-38, %v343_v5  ;;  %vm342_vm13 = vcmp.eq.f32.partialorder %v341_v8, 8.507059e+37 }
  0xf0   :  { %v322_v58 = vadd.f32 %v710_v48, %v321_v56 }
  0xf2   :  { %v326_v60 = vsel %vm325_vm8, %v710_v48, %v322_v58  ;;  %vm587_vm8 = vcmask 257024  }
  0xf3   :  { %v712_v61 = vpop.eup %711  ;;  %v331_v62 = vsel %vm328_vm9, %v330_v59, %v326_v60 }
  0xf4   :  { %v333_v63 = vmul.f32 %v712_v61, %v317_v52  ;;  %v346_v0 = vmul.f32 %v331_v62, %v985_v3  ;;  %v348_v1 = vmul.f32 %v331_v62, %v987_v6  ;;  %vm338_vm10 = vweird.f32 %v712_v61 }
  0xf5   :  { %vm339_vm12 = vmor %vm337_vm11, %vm338_vm10 }
  0xf6   :  { %v334_v4 = vsub.f32 1.0, %v333_v63  ;;  %v356_v6 = vrot.slane %v346_v0, 7  ;;  %v363_v16 = vrot.slane %v348_v1, 7 }
  0xf8   :  { %v335_v7 = vmul.f32 %v712_v61, %v334_v4 }
  0xfa   :  { %v336_v9 = vadd.f32 %v712_v61, %v335_v7 }
  0xfc   :  { %v340_v12 = vsel %vm339_vm12, %v712_v61, %v336_v9 }
  0xfd   :  { %v345_v13 = vsel %vm342_vm13, %v344_v10, %v340_v12 }
  0xfe   :  { %v347_v14 = vmul.f32 %v345_v13, %v993_v22  ;;  %v349_v3 = vmul.f32 %v345_v13, %v997_v26 }
 0x100   :  { %v357_v15 = vrot.slane %v347_v14, 7  ;;  %v364_v17 = vrot.slane %v349_v3, 7 }
 0x102   :  { %v359_v18 = vsel %vm358_vm15, %v356_v6, %v357_v15  ;;  %v360_v19 = vsel %vm358_vm15, %v357_v15, %v356_v6  ;;  %v365_v20 = vsel %vm358_vm15, %v363_v16, %v364_v17  ;;  %v366_v21 = vsel %vm358_vm15, %v364_v17, %v363_v16 }
 0x103   :  { %v361_v23 = vsel %vm355_vm14, %v360_v19, 1.0  ;;  %v362_v24 = vsel %vm355_vm14, %v359_v18, 1.0  ;;  %v367_v25 = vsel %vm355_vm14, %v366_v21, 0.0  ;;  %v368_v27 = vsel %vm355_vm14, %v365_v20, 0.0 }
 0x104   :  { %v369_v28 = vmul.f32 %v361_v23, %v346_v0  ;;  %v370_v22 = vmul.f32 %v362_v24, %v347_v14  ;;  %v371_v29 = vmul.f32 %v367_v25, %v348_v1  ;;  %v372_v26 = vmul.f32 %v368_v27, %v349_v3 }
 0x105   :  { %v375_v30 = vmul.f32 %v367_v25, %v346_v0  ;;  %v376_v31 = vmul.f32 %v368_v27, %v347_v14  ;;  %v377_v32 = vmul.f32 %v361_v23, %v348_v1  ;;  %v378_v33 = vmul.f32 %v362_v24, %v349_v3  ;;  %v675_v23 = vld [vmem:[#allocation10 + $0x8] sm:$0xff]  ;;  %v677_v24 = vld [vmem:[#allocation11 + $0x8] sm:$0xff]  ;;  %v676_v25 = vld [vmem:[#allocation11] sm:$0xff] }
 0x106   :  { %v373_v34 = vsub.f32 %v369_v28, %v371_v29  ;;  %v374_v35 = vsub.f32 %v370_v22, %v372_v26  ;;  %535 = vmatpush.bf16.msrb.mxu0 %v675_v23  ;;  %506 = vmatpush.bf16.msra.mxu3 %v677_v24  ;;  %v674_v27 = vld [vmem:[#allocation10] sm:$0xff] }
 0x107   :  { %v379_v36 = vadd.f32 %v377_v32, %v375_v30  ;;  %v380_v37 = vadd.f32 %v378_v33, %v376_v31 }
 0x108   :  { %v382_v38 = vrot.slane %v373_v34, 6  ;;  %v383_v39 = vrot.slane %v374_v35, 6 }
 0x109   :  { %v389_v40 = vrot.slane %v379_v36, 6  ;;  %v390_v41 = vrot.slane %v380_v37, 6 }
 0x10a   :  { %v385_v42 = vsel %vm384_vm1, %v382_v38, %v383_v39  ;;  %v386_v43 = vsel %vm384_vm1, %v383_v39, %v382_v38  ;;  %507 = vmatpush.bf16.msra.mxu3 %v676_v25  ;;  %536 = vmatpush.bf16.msrb.mxu0 %v674_v27 }
 0x10b   :  { %v387_v44 = vsel %vm381_vm2, %v386_v43, 1.0  ;;  %v388_v45 = vsel %vm381_vm2, %v385_v42, 1.0  ;;  %v391_v46 = vsel %vm384_vm1, %v389_v40, %v390_v41  ;;  %v392_v47 = vsel %vm384_vm1, %v390_v41, %v389_v40 }
 0x10c   :  { %v393_v48 = vsel %vm381_vm2, %v392_v47, 0.0  ;;  %v394_v49 = vsel %vm381_vm2, %v391_v46, 0.0  ;;  %v395_v50 = vmul.f32 %v387_v44, %v373_v34  ;;  %v396_v51 = vmul.f32 %v388_v45, %v374_v35 }
 0x10d   :  { %v397_v52 = vmul.f32 %v393_v48, %v379_v36  ;;  %v398_v53 = vmul.f32 %v394_v49, %v380_v37  ;;  %v401_v54 = vmul.f32 %v393_v48, %v373_v34  ;;  %v402_v55 = vmul.f32 %v394_v49, %v374_v35 }
 0x10e   :  { %v403_v56 = vmul.f32 %v387_v44, %v379_v36  ;;  %v404_v57 = vmul.f32 %v388_v45, %v380_v37 }
 0x10f   :  { %v399_v58 = vsub.f32 %v395_v50, %v397_v52  ;;  %v400_v59 = vsub.f32 %v396_v51, %v398_v53 }
 0x110   :  { %v405_v60 = vadd.f32 %v403_v56, %v401_v54  ;;  %v406_v61 = vadd.f32 %v404_v57, %v402_v55 }
 0x111   :  { %v408_v62 = vrot.slane %v399_v58, 4  ;;  %v409_v63 = vrot.slane %v400_v59, 4 }
 0x112   :  { %v415_v0 = vrot.slane %v405_v60, 4  ;;  %v416_v1 = vrot.slane %v406_v61, 4 }
 0x113   :  { %v411_v4 = vsel %vm410_vm3, %v408_v62, %v409_v63  ;;  %v412_v5 = vsel %vm410_vm3, %v409_v63, %v408_v62 }
 0x114   :  { %v413_v7 = vsel %vm407_vm4, %v412_v5, 1.0  ;;  %v414_v8 = vsel %vm407_vm4, %v411_v4, 1.0  ;;  %v417_v9 = vsel %vm410_vm3, %v415_v0, %v416_v1  ;;  %v418_v10 = vsel %vm410_vm3, %v416_v1, %v415_v0 }
 0x115   :  { %v419_v12 = vsel %vm407_vm4, %v418_v10, 0.0  ;;  %v420_v13 = vsel %vm407_vm4, %v417_v9, 0.0  ;;  %v421_v14 = vmul.f32 %v413_v7, %v399_v58  ;;  %v429_v3 = vmul.f32 %v413_v7, %v405_v60 }
 0x116   :  { %v423_v6 = vmul.f32 %v419_v12, %v405_v60  ;;  %v427_v15 = vmul.f32 %v419_v12, %v399_v58  ;;  %v422_v16 = vmul.f32 %v414_v8, %v400_v59  ;;  %v424_v2 = vmul.f32 %v420_v13, %v406_v61 }
 0x117   :  { %v428_v17 = vmul.f32 %v420_v13, %v400_v59  ;;  %v430_v11 = vmul.f32 %v414_v8, %v406_v61 }
 0x118   :  { %v425_v18 = vsub.f32 %v421_v14, %v423_v6  ;;  %v431_v19 = vadd.f32 %v429_v3, %v427_v15  ;;  %v426_v20 = vsub.f32 %v422_v16, %v424_v2 }
 0x119   :  { %v432_v21 = vadd.f32 %v430_v11, %v428_v17 }
 0x172   :  { %v462_v28 = vpop.f32.mrf.mxu2 }
 0x173   :  { %v467_v22 = vpack.c.bf16 %v462_v28, %v462_v28 }
 0x175   :  { %v469_v26 = vunpack.c.l.bf16 %v467_v22 }
 0x177   :  { %v471_v32 = vmul.f32 %v469_v26, %v425_v18  ;;  %v474_v33 = vmul.f32 %v469_v26, %v431_v19 }
 0x17a   :  { %v464_v29 = vpop.f32.mrf.mxu2 }
 0x17b   :  { %v468_v30 = vpack.c.bf16 %v464_v29, %v464_v29 }
 0x17d   :  { %v470_v31 = vunpack.c.l.bf16 %v468_v30 }
 0x17f   :  { %v472_v34 = vmul.f32 %v470_v31, %v426_v20  ;;  %v475_v35 = vmul.f32 %v470_v31, %v432_v21 }
 0x181   :  { %v473_v36 = vpack.c.bf16 %v472_v34, %v471_v32  ;;  %v476_v37 = vpack.c.bf16 %v475_v35, %v474_v33 }
 0x183   :  { %655 = vmatmul.msk.bf16.vlgmr.msra.gmra.mxu3 %vm142_vm0, %v476_v37  ;;  %664 = vmatmul.msk.bf16.vlgmr.msrb.gmra.mxu0 %vm142_vm0, %v473_v36 }
 0x200   :  { %v538_v38 = vpop.f32.mrf.mxu0 }
 0x206   :  { %v509_v39 = vpop.f32.mrf.mxu3 }
 0x207   :  { %v539_v40 = vadd.f32 %v538_v38, %v509_v39 }
 0x208   :  { %v540_v44 = vpop.f32.mrf.mxu0 }
 0x209   :  { %v543_v41 = vpack.c.bf16 %v539_v40, %v539_v40 }
 0x20b   :  { %v545_v42 = vunpack.c.l.bf16 %v543_v41 }
 0x20d   :  { %v665_v43 = vmul.f32 -1.442695, %v545_v42 }
 0x20e   :  { %v511_v45 = vpop.f32.mrf.mxu3 }
 0x20f   :  { %713 = vpow2.f32 %v665_v43  ;;  %v541_v46 = vadd.f32 %v540_v44, %v511_v45 }
 0x211   :  { %v544_v47 = vpack.c.bf16 %v541_v46, %v541_v46 }
 0x213   :  { %v546_v48 = vunpack.c.l.bf16 %v544_v47 }
 0x215   :  { %v714_v49 = vpop.eup %713  ;;  %v666_v50 = vmul.f32 -1.442695, %v546_v48 }
 0x216   :  { %v553_v51 = vadd.f32 1.0, %v714_v49 }
 0x217   :  { %715 = vpow2.f32 %v666_v50 }
 0x218   :  { %717 = vrcp.f32 %v553_v51  ;;  %v566_v57 = vand.u32 2147483648, %v553_v51  ;;  %v564_v59 = vand.u32 2147483647, %v553_v51  ;;  %vm560_vm5 = vweird.f32 %v553_v51 }
 0x21a   :  { %v567_v62 = vor.u32 1.1754944e-38, %v566_v57  ;;  %vm565_vm7 = vcmp.eq.f32.partialorder %v564_v59, 8.507059e+37 }
 0x21d   :  { %v716_v52 = vpop.eup %715 }
 0x21e   :  { %v718_v53 = vpop.eup %717  ;;  %v554_v54 = vadd.f32 1.0, %v716_v52 }
 0x21f   :  { %v556_v55 = vmul.f32 %v718_v53, %v553_v51  ;;  %vm561_vm0 = vweird.f32 %v718_v53 }
 0x220   :  { %719 = vrcp.f32 %v554_v54  ;;  %vm562_vm6 = vmor %vm560_vm5, %vm561_vm0  ;;  %v581_v7 = vand.u32 2147483648, %v554_v54  ;;  %v579_v9 = vand.u32 2147483647, %v554_v54  ;;  %vm575_vm10 = vweird.f32 %v554_v54 }
 0x221   :  { %v557_v56 = vsub.f32 1.0, %v556_v55 }
 0x222   :  { %v582_v12 = vor.u32 1.1754944e-38, %v581_v7  ;;  %vm580_vm12 = vcmp.eq.f32.partialorder %v579_v9, 8.507059e+37 }
 0x223   :  { %v558_v58 = vmul.f32 %v718_v53, %v557_v56 }
 0x225   :  { %v559_v60 = vadd.f32 %v718_v53, %v558_v58 }
 0x226   :  { %v720_v61 = vpop.eup %719 }
 0x227   :  { %v571_v63 = vmul.f32 %v720_v61, %v554_v54  ;;  %v563_v0 = vsel %vm562_vm6, %v718_v53, %v559_v60  ;;  %vm576_vm9 = vweird.f32 %v720_v61 }
 0x228   :  { %v568_v1 = vsel %vm565_vm7, %v567_v62, %v563_v0  ;;  %vm577_vm11 = vmor %vm575_vm10, %vm576_vm9 }
 0x229   :  { %v572_v4 = vsub.f32 1.0, %v571_v63  ;;  %v585_v5 = vpack.c.bf16 %v568_v1, %v568_v1 }
 0x22b   :  { %v573_v8 = vmul.f32 %v720_v61, %v572_v4  ;;  %588 = vst.msk [vmem:[#allocation13] sm:$0xf] %vm587_vm8, %v585_v5 }
 0x22d   :  { %v574_v10 = vadd.f32 %v720_v61, %v573_v8 }
 0x22f   :  { %v578_v13 = vsel %vm577_vm11, %v720_v61, %v574_v10 }
 0x230   :  { %v583_v14 = vsel %vm580_vm12, %v582_v12, %v578_v13 }
 0x231   :  { %v586_v3 = vpack.c.bf16 %v583_v14, %v583_v14 }
 0x233   :  { %589 = vst.msk [vmem:[#allocation13 + $0x4] sm:$0xf] %vm587_vm8, %v586_v3 }
 0x234   :  { %602 = dma.vmem_to_hbm [thread:$0]  %s595_s24, 128, %s597_s27, [#allocation4], %s900_s29, %s900_s29, %s901_s30  }
 0x235   :  { %897 = dma.done.wait [#allocation4], 128  }
 0x236   :  { %898 = vsyncadd [#allocation4], 4294967168 }
 0x237   :  { %607 = vsyncpa [#allocation3], 1 }
 0x238   :  { %608 = vsyncpa [#allocation6], 1 }
 0x239   :  { %609 = vsyncpa [#allocation9], 1 }
 0x23a   :  { %610 = vsyncpa [#allocation12], 1 }
 0x23b   :  { %611 = vsyncpa [#allocation4], 1 }

</bundles_post_ra>
